<compile_context>
chip_gen: v7x
topology: tpu7x:2x2x1
jax: 0.10.0
libtpu: 0.0.40
codegen_flags: <defaults>
</compile_context>

<pallas_src>
import functools

import jax
import jax.numpy as jnp
from jax.experimental import pallas as pl
from jax.experimental.pallas import tpu as pltpu


def _round_up(x, m):
    return ((x + m - 1) // m) * m


def _make_kernel(KH, KW, Wp, TILE_M):
    """Fused conv + folded-BN + SiLU kernel for one (image, spatial-tile) step."""
    halo = (KH - 1) * Wp + (KW - 1)
    assert halo <= TILE_M, "tile must cover the conv halo"

    def kernel(x_ref, w_ref, b_ref, o_ref, acc_ref):
        # x_ref : (NCHUNK, C1, TILE_M) bf16 -- whole padded image, lane-chunked
        # w_ref : (KH, C2, KW*C1)      bf16 -- BN scale pre-folded
        # b_ref : (C2, 1)              f32  -- folded BN bias
        # o_ref : (C2, TILE_M)         bf16 -- lane-dense output tile
        # acc_ref:(C2, TILE_M)         f32  -- VMEM scratch accumulator
        m = pl.program_id(1)
        lo = x_ref[m]                                   # (C1, TILE_M)
        hi = x_ref[m + 1]                               # (C1, TILE_M)
        cat = jnp.concatenate([lo, hi], axis=-1)        # (C1, 2*TILE_M), aligned

        for kh in range(KH):                            # static unroll
            row = kh * Wp
            # stack the KW lane-shifted views along the contraction axis
            parts = [cat[:, row + kw: row + kw + TILE_M] for kw in range(KW)]
            stack = jnp.concatenate(parts, axis=0)      # (KW*C1, TILE_M)
            contrib = jnp.dot(w_ref[kh], stack,
                              preferred_element_type=jnp.float32)
            if kh == 0:
                acc_ref[...] = contrib
            else:
                acc_ref[...] += contrib

        y = acc_ref[...] + b_ref[...]                   # folded BatchNorm bias
        o_ref[...] = (y * jax.nn.sigmoid(y)).astype(o_ref.dtype)   # SiLU

    return kernel


@functools.partial(jax.jit, static_argnames=("eps", "tile_lanes"))
def conv_bn_silu(x_nchw, weight, gamma, beta, running_mean, running_var,
                 *, eps=1e-5, tile_lanes=1024):
    """Equivalent of Conv.forward for odd k, s=1, p=autopad, g=1, d=1, act=SiLU."""
    N, C1, H, W = x_nchw.shape
    C2, C1w, KH, KW = weight.shape
    assert C1w == C1 and KH % 2 == 1 and KW % 2 == 1
    ph, pw = KH // 2, KW // 2
    Hp, Wp = H + 2 * ph, W + 2 * pw
    halo = (KH - 1) * Wp + (KW - 1)

    # ---- generation-aware VMEM budget ------------------------------------
    try:
        vmem_phys = int(pltpu.get_tpu_info().vmem_capacity_bytes)
    except Exception:
        vmem_phys = 64 << 20          # v7x-safe fallback
    vmem_budget = int(0.72 * vmem_phys)   # ~46 MiB on v7x, ~92 MiB on v5e/v6e

    # ---- lane tiling: multiple of 128, >= halo, tile-to-fit ---------------
    min_tile = max(128, _round_up(halo, 128))
    TILE_M = max(min_tile,
                 min(_round_up(int(tile_lanes), 128), _round_up(H * Wp, 128)))

    w_bytes = KH * C2 * KW * C1 * 2

    def vmem_estimate(tile):
        n_tiles = (H * Wp + tile - 1) // tile
        x_b = (n_tiles + 1) * C1 * tile * 2          # resident chunked image
        o_b = C2 * tile * 2                          # bf16 output tile
        acc_b = C2 * tile * 4                        # f32 scratch accumulator
        tmp_b = (KW + 2) * C1 * tile * 2             # stacked operand + cat temp
        return 2 * (x_b + o_b + w_bytes + C2 * 4) + acc_b + tmp_b + (2 << 20)

    while TILE_M > min_tile and vmem_estimate(TILE_M) > vmem_budget:
        TILE_M -= 128

    num_m = (H * Wp + TILE_M - 1) // TILE_M
    NCHUNK = num_m + 1                   # kernel reads chunks m and m+1
    FLATC = NCHUNK * TILE_M              # >= Hp*Wp because TILE_M >= halo
    M_OUT_PAD = num_m * TILE_M

    # ---- glue: pad -> bf16 -> lane-chunked layout (one fused XLA pass) ----
    xp = jnp.pad(x_nchw.astype(jnp.bfloat16),
                 ((0, 0), (0, 0), (ph, ph), (pw, pw)))          # (N,C1,Hp,Wp)
    xf = xp.reshape(N, C1, Hp * Wp)
    xf = jnp.pad(xf, ((0, 0), (0, 0), (0, FLATC - Hp * Wp)))
    xc = jnp.transpose(xf.reshape(N, C1, NCHUNK, TILE_M),
                       (0, 2, 1, 3))                            # (N,NCHUNK,C1,TILE_M)

    # ---- fold eval-mode BatchNorm into the conv weights -------------------
    inv_std = gamma / jnp.sqrt(running_var + eps)                      # (C2,)
    w_folded = weight.astype(jnp.float32) * inv_std[:, None, None, None]
    # (KH, C2, KW*C1); contraction index = kw*C1 + c1, matching the kernel stack
    w_kwfold = jnp.transpose(w_folded, (2, 0, 3, 1)).reshape(KH, C2, KW * C1)
    w_kwfold = w_kwfold.astype(jnp.bfloat16)
    bias = (beta - running_mean * inv_std).reshape(C2, 1).astype(jnp.float32)

    cost = pl.CostEstimate(
        flops=2 * N * M_OUT_PAD * C2 * C1 * KH * KW,
        transcendentals=N * M_OUT_PAD * C2,
        bytes_accessed=(N * (NCHUNK * C1 * TILE_M * 2 + C2 * M_OUT_PAD * 2)
                        + w_bytes + C2 * 4),
    )
    vmem_limit = int(min(max(vmem_estimate(TILE_M), 16 << 20), vmem_budget))

    ybig = pl.pallas_call(
        _make_kernel(KH, KW, Wp, TILE_M),
        out_shape=jax.ShapeDtypeStruct((N, C2, M_OUT_PAD), jnp.bfloat16),
        grid_spec=pltpu.PrefetchScalarGridSpec(
            num_scalar_prefetch=0,
            grid=(N, num_m),
            in_specs=[
                # whole padded image, resident across the m axis
                pl.BlockSpec((None, NCHUNK, C1, TILE_M), lambda n, m: (n, 0, 0, 0)),
                # resident folded weights / bias
                pl.BlockSpec((KH, C2, KW * C1), lambda n, m: (0, 0, 0)),
                pl.BlockSpec((C2, 1), lambda n, m: (0, 0)),
            ],
            out_specs=pl.BlockSpec((None, C2, TILE_M), lambda n, m: (n, 0, m)),
            scratch_shapes=[pltpu.VMEM((C2, TILE_M), jnp.float32)],
        ),
        compiler_params=pltpu.CompilerParams(
            dimension_semantics=("parallel", "parallel"),
            vmem_limit_bytes=vmem_limit,
        ),
        cost_estimate=cost,
    )(xc, w_kwfold, bias)

    # Padded-column contract: flat index p -> (h = p // Wp, w = p % Wp), columns
    # w >= W are garbage anchors computed on zero padding.  Strip once (bf16).
    out = ybig[:, :, :H * Wp].reshape(N, C2, H, Wp)[:, :, :, :W]
    return out


def _reference(x_nchw, weight, gamma, beta, running_mean, running_var, eps=1e-5,
               quantize=False):
    """Pure-JAX reference matching PyTorch Conv.forward (eval-mode BN + SiLU)."""
    C2, _, KH, KW = weight.shape
    x = x_nchw.astype(jnp.float32)
    inv_std = gamma / jnp.sqrt(running_var + eps)
    w = weight.astype(jnp.float32) * inv_std[:, None, None, None]
    b = (beta - running_mean * inv_std).reshape(1, -1, 1, 1)
    if quantize:  # mimic the kernel's bf16 MXU operands
        x = x.astype(jnp.bfloat16).astype(jnp.float32)
        w = w.astype(jnp.bfloat16).astype(jnp.float32)
    y = jax.lax.conv_general_dilated(
        x, w, window_strides=(1, 1),
        padding=((KH // 2, KH // 2), (KW // 2, KW // 2)),
        dimension_numbers=("NCHW", "OIHW", "NCHW"))
    y = y + b
    return y * jax.nn.sigmoid(y)


if __name__ == "__main__":
    key = jax.random.PRNGKey(0)
    k_x, k_w, k_g, k_b, k_m, k_v = jax.random.split(key, 6)

    N, C1, H, W = 2, 4, 16, 16
    C2, KH, KW = 8, 3, 3

    x = jax.random.normal(k_x, (N, C1, H, W), dtype=jnp.float32)
    weight = jax.random.normal(k_w, (C2, C1, KH, KW), dtype=jnp.float32) * 0.1
    gamma = jax.random.uniform(k_g, (C2,), jnp.float32, 0.5, 1.5)
    beta = jax.random.normal(k_b, (C2,), dtype=jnp.float32) * 0.1
    running_mean = jax.random.normal(k_m, (C2,), dtype=jnp.float32) * 0.1
    running_var = jax.random.uniform(k_v, (C2,), jnp.float32, 0.5, 1.5)

    # tile_lanes=128 -> grid (N, 3): exercises multi-tile indexing and the
    # padded (garbage-anchor) tail tile.
    out = conv_bn_silu(x, weight, gamma, beta, running_mean, running_var,
                       tile_lanes=128)
    out = jax.block_until_ready(out)
    assert out.shape == (N, C2, H, W)
    out_f32 = out.astype(jnp.float32)

    # check vs a reference using the same bf16-quantized operands (+ bf16 output)
    ref_q = _reference(x, weight, gamma, beta, running_mean, running_var,
                       quantize=True)
    assert jnp.allclose(out_f32, ref_q, atol=1.5e-2, rtol=1.5e-2), \
        "mismatch vs quantized ref"

    # loose check vs the exact f32 PyTorch-equivalent reference
    ref = _reference(x, weight, gamma, beta, running_mean, running_var)
    assert jnp.allclose(out_f32, ref, atol=5e-2, rtol=5e-2), \
        "mismatch vs f32 reference"

    print("KERNEL_OK")
</pallas_src>

<mosaic_0001>
module attributes {stable_mosaic.version = 11 : i64} {
  func.func @kernel(%arg0: i32, %arg1: i32, %arg2: memref<1x4x4x128xbf16, #tpu.memory_space<vmem>>, %arg3: memref<3x8x12xbf16, #tpu.memory_space<vmem>>, %arg4: memref<8x1xf32, #tpu.memory_space<vmem>>, %arg5: memref<1x8x128xbf16, #tpu.memory_space<vmem>>, %arg6: memref<8x128xf32, #tpu.memory_space<vmem>>) attributes {dimension_semantics = [#tpu.dimension_semantics<parallel>, #tpu.dimension_semantics<parallel>], iteration_bounds = array<i64: 2, 3>, scalar_prefetch = 0 : i64, scratch_operands = 1 : i64, tpu.core_type = #tpu.core_type<tc>, window_params = [{transform_indices = @transform_0, window_bounds = array<i64: 1, 4, 4, 128>}, {pipeline_mode = #tpu.pipeline_mode<synchronous>, transform_indices = @transform_1, window_bounds = array<i64: 3, 8, 12>}, {pipeline_mode = #tpu.pipeline_mode<synchronous>, transform_indices = @transform_2, window_bounds = array<i64: 8, 1>}, {transform_indices = @transform_3, window_bounds = array<i64: 1, 8, 128>}]} {
    %c0 = arith.constant 0 : index
    %0 = arith.index_cast %arg1 : i32 to index
    %c0_0 = arith.constant 0 : index
    %c0_1 = arith.constant 0 : index
    %1 = vector.load %arg2[%c0, %0, %c0_0, %c0_1] : memref<1x4x4x128xbf16, #tpu.memory_space<vmem>>, vector<1x1x4x128xbf16>
    %2 = vector.shape_cast %1 : vector<1x1x4x128xbf16> to vector<4x128xbf16>
    %c1_i32 = arith.constant 1 : i32
    %3 = arith.addi %arg1, %c1_i32 : i32
    %c0_2 = arith.constant 0 : index
    %4 = arith.index_cast %3 : i32 to index
    %c0_3 = arith.constant 0 : index
    %c0_4 = arith.constant 0 : index
    %5 = vector.load %arg2[%c0_2, %4, %c0_3, %c0_4] : memref<1x4x4x128xbf16, #tpu.memory_space<vmem>>, vector<1x1x4x128xbf16>
    %6 = vector.shape_cast %5 : vector<1x1x4x128xbf16> to vector<4x128xbf16>
    %7 = tpu.concatenate %2, %6 in 1 : vector<4x128xbf16>, vector<4x128xbf16> -> vector<4x256xbf16>
    %8 = vector.extract_strided_slice %7 {offsets = [0, 0], sizes = [4, 128], strides = [1, 1]} : vector<4x256xbf16> to vector<4x128xbf16>
    %9 = vector.extract_strided_slice %7 {offsets = [0, 1], sizes = [4, 128], strides = [1, 1]} : vector<4x256xbf16> to vector<4x128xbf16>
    %10 = vector.extract_strided_slice %7 {offsets = [0, 2], sizes = [4, 128], strides = [1, 1]} : vector<4x256xbf16> to vector<4x128xbf16>
    %11 = tpu.concatenate %8, %9, %10 in 0 : vector<4x128xbf16>, vector<4x128xbf16>, vector<4x128xbf16> -> vector<12x128xbf16>
    %c0_5 = arith.constant 0 : index
    %c0_6 = arith.constant 0 : index
    %c0_7 = arith.constant 0 : index
    %12 = vector.load %arg3[%c0_5, %c0_6, %c0_7] : memref<3x8x12xbf16, #tpu.memory_space<vmem>>, vector<1x8x12xbf16>
    %13 = vector.shape_cast %12 : vector<1x8x12xbf16> to vector<8x12xbf16>
    %cst = arith.constant dense<0.000000e+00> : vector<8x128xf32>
    %14 = tpu.matmul %13, %11, %cst {dimension_numbers = #tpu.dot_dimension_numbers<[1], [0], [0], [1], [0, 0, 1, 1], [], []>} : vector<8x12xbf16>, vector<12x128xbf16>, vector<8x128xf32> -> vector<8x128xf32>
    %c0_8 = arith.constant 0 : index
    %c0_9 = arith.constant 0 : index
    %15 = vector.load %arg6[%c0_8, %c0_9] : memref<8x128xf32, #tpu.memory_space<vmem>>, vector<8x128xf32>
    tpu.vector_store %arg6[%c0_8, %c0_9], %14 {strides = array<i32>} : memref<8x128xf32, #tpu.memory_space<vmem>>, vector<8x128xf32>,
    %16 = vector.extract_strided_slice %7 {offsets = [0, 18], sizes = [4, 128], strides = [1, 1]} : vector<4x256xbf16> to vector<4x128xbf16>
    %17 = vector.extract_strided_slice %7 {offsets = [0, 19], sizes = [4, 128], strides = [1, 1]} : vector<4x256xbf16> to vector<4x128xbf16>
    %18 = vector.extract_strided_slice %7 {offsets = [0, 20], sizes = [4, 128], strides = [1, 1]} : vector<4x256xbf16> to vector<4x128xbf16>
    %19 = tpu.concatenate %16, %17, %18 in 0 : vector<4x128xbf16>, vector<4x128xbf16>, vector<4x128xbf16> -> vector<12x128xbf16>
    %c1 = arith.constant 1 : index
    %c0_10 = arith.constant 0 : index
    %c0_11 = arith.constant 0 : index
    %20 = vector.load %arg3[%c1, %c0_10, %c0_11] : memref<3x8x12xbf16, #tpu.memory_space<vmem>>, vector<1x8x12xbf16>
    %21 = vector.shape_cast %20 : vector<1x8x12xbf16> to vector<8x12xbf16>
    %cst_12 = arith.constant dense<0.000000e+00> : vector<8x128xf32>
    %22 = tpu.matmul %21, %19, %cst_12 {dimension_numbers = #tpu.dot_dimension_numbers<[1], [0], [0], [1], [0, 0, 1, 1], [], []>} : vector<8x12xbf16>, vector<12x128xbf16>, vector<8x128xf32> -> vector<8x128xf32>
    %c0_13 = arith.constant 0 : index
    %c0_14 = arith.constant 0 : index
    %23 = vector.load %arg6[%c0_13, %c0_14] : memref<8x128xf32, #tpu.memory_space<vmem>>, vector<8x128xf32>
    %24 = arith.addf %23, %22 : vector<8x128xf32>
    %c0_15 = arith.constant 0 : index
    %c0_16 = arith.constant 0 : index
    %25 = vector.load %arg6[%c0_15, %c0_16] : memref<8x128xf32, #tpu.memory_space<vmem>>, vector<8x128xf32>
    tpu.vector_store %arg6[%c0_15, %c0_16], %24 {strides = array<i32>} : memref<8x128xf32, #tpu.memory_space<vmem>>, vector<8x128xf32>,
    %26 = vector.extract_strided_slice %7 {offsets = [0, 36], sizes = [4, 128], strides = [1, 1]} : vector<4x256xbf16> to vector<4x128xbf16>
    %27 = vector.extract_strided_slice %7 {offsets = [0, 37], sizes = [4, 128], strides = [1, 1]} : vector<4x256xbf16> to vector<4x128xbf16>
    %28 = vector.extract_strided_slice %7 {offsets = [0, 38], sizes = [4, 128], strides = [1, 1]} : vector<4x256xbf16> to vector<4x128xbf16>
    %29 = tpu.concatenate %26, %27, %28 in 0 : vector<4x128xbf16>, vector<4x128xbf16>, vector<4x128xbf16> -> vector<12x128xbf16>
    %c2 = arith.constant 2 : index
    %c0_17 = arith.constant 0 : index
    %c0_18 = arith.constant 0 : index
    %30 = vector.load %arg3[%c2, %c0_17, %c0_18] : memref<3x8x12xbf16, #tpu.memory_space<vmem>>, vector<1x8x12xbf16>
    %31 = vector.shape_cast %30 : vector<1x8x12xbf16> to vector<8x12xbf16>
    %cst_19 = arith.constant dense<0.000000e+00> : vector<8x128xf32>
    %32 = tpu.matmul %31, %29, %cst_19 {dimension_numbers = #tpu.dot_dimension_numbers<[1], [0], [0], [1], [0, 0, 1, 1], [], []>} : vector<8x12xbf16>, vector<12x128xbf16>, vector<8x128xf32> -> vector<8x128xf32>
    %c0_20 = arith.constant 0 : index
    %c0_21 = arith.constant 0 : index
    %33 = vector.load %arg6[%c0_20, %c0_21] : memref<8x128xf32, #tpu.memory_space<vmem>>, vector<8x128xf32>
    %34 = arith.addf %33, %32 : vector<8x128xf32>
    %c0_22 = arith.constant 0 : index
    %c0_23 = arith.constant 0 : index
    %35 = vector.load %arg6[%c0_22, %c0_23] : memref<8x128xf32, #tpu.memory_space<vmem>>, vector<8x128xf32>
    tpu.vector_store %arg6[%c0_22, %c0_23], %34 {strides = array<i32>} : memref<8x128xf32, #tpu.memory_space<vmem>>, vector<8x128xf32>,
    %c0_24 = arith.constant 0 : index
    %c0_25 = arith.constant 0 : index
    %36 = vector.load %arg6[%c0_24, %c0_25] : memref<8x128xf32, #tpu.memory_space<vmem>>, vector<8x128xf32>
    %c0_26 = arith.constant 0 : index
    %c0_27 = arith.constant 0 : index
    %37 = vector.load %arg4[%c0_26, %c0_27] : memref<8x1xf32, #tpu.memory_space<vmem>>, vector<8x1xf32>
    %38 = vector.broadcast %37 : vector<8x1xf32> to vector<8x128xf32>
    %39 = arith.addf %36, %38 : vector<8x128xf32>
    %40 = arith.negf %39 : vector<8x128xf32>
    %41 = math.exp %40 : vector<8x128xf32>
    %cst_28 = arith.constant 1.000000e+00 : f32
    %42 = vector.broadcast %cst_28 : f32 to vector<8x128xf32>
    %43 = arith.addf %42, %41 : vector<8x128xf32>
    %44 = arith.divf %42, %43 : vector<8x128xf32>
    %45 = arith.mulf %39, %44 : vector<8x128xf32>
    %46 = arith.truncf %45 : vector<8x128xf32> to vector<8x128xbf16>
    %c0_29 = arith.constant 0 : index
    %c0_30 = arith.constant 0 : index
    %c0_31 = arith.constant 0 : index
    %47 = vector.load %arg5[%c0_29, %c0_30, %c0_31] : memref<1x8x128xbf16, #tpu.memory_space<vmem>>, vector<1x8x128xbf16>
    %48 = vector.shape_cast %47 : vector<1x8x128xbf16> to vector<8x128xbf16>
    %49 = vector.shape_cast %46 : vector<8x128xbf16> to vector<1x8x128xbf16>
    tpu.vector_store %arg5[%c0_29, %c0_30, %c0_31], %49 {strides = array<i32>} : memref<1x8x128xbf16, #tpu.memory_space<vmem>>, vector<1x8x128xbf16>,
    return
  }
  func.func @transform_0(%arg0: i32, %arg1: i32) -> (i32, i32, i32, i32) {
    %c0_i32 = arith.constant 0 : i32
    %c0_i32_0 = arith.constant 0 : i32
    %c0_i32_1 = arith.constant 0 : i32
    %c0_i32_2 = arith.constant 0 : i32
    return %arg0, %c0_i32, %c0_i32_0, %c0_i32_1 : i32, i32, i32, i32
  }
  func.func @transform_1(%arg0: i32, %arg1: i32) -> (i32, i32, i32) {
    %c0_i32 = arith.constant 0 : i32
    %c0_i32_0 = arith.constant 0 : i32
    %c0_i32_1 = arith.constant 0 : i32
    %c0_i32_2 = arith.constant 0 : i32
    return %c0_i32, %c0_i32_0, %c0_i32_1 : i32, i32, i32
  }
  func.func @transform_2(%arg0: i32, %arg1: i32) -> (i32, i32) {
    %c0_i32 = arith.constant 0 : i32
    %c0_i32_0 = arith.constant 0 : i32
    %c0_i32_1 = arith.constant 0 : i32
    return %c0_i32, %c0_i32_0 : i32, i32
  }
  func.func @transform_3(%arg0: i32, %arg1: i32) -> (i32, i32, i32) {
    %c0_i32 = arith.constant 0 : i32
    %c0_i32_0 = arith.constant 0 : i32
    return %arg0, %c0_i32, %arg1 : i32, i32, i32
  }
}

</mosaic_0001>

<bundles_post_ra>
// kernel: conv_bn_silu.1
= control target key start
LH: loop header
LB: loop body
LE: loop exit
PB: predicated region body
PF: predicated region fallthrough
CT: control target
= control target key end

     0   :  { %s660_s12 = smov 0   ;;  %s662_s13 = smov 0   ;;  %s741_s0 = inlined_call_operand.vmem [shape: bf16[2,4,4,128], index: 0, kind: input, shape index: {}]   ;;  %s742_s1 = inlined_call_operand.vmem [shape: bf16[3,8,12], index: 1, kind: input, shape index: {}]   ;;  %s743_s2 = inlined_call_operand.vmem [shape: f32[8,1], index: 2, kind: input, shape index: {}]   ;;  %s744_s3 = inlined_call_operand.vmem [shape: bf16[2,8,384], index: 3, kind: output, shape index: {}]  }
   0x1   :  { %s664_s14 = smov 0   ;;  %s666_s15 = smov 0  }
   0x2   :  { %s668_s16 = smov 0  }
   0x3 LB: > { %s22_s17 = sadd.s32 1, %s623_s14  ;;  %s25_s18 = sadd.s32 1, %s627_s15  ;;  %s631_s16 = sphi %s668_s16, %s13_s16   ;;  %s627_s15 = sphi %s666_s15, %s748_s15   ;;  %s623_s14 = sphi %s664_s14, %s747_s14   ;;  %s619_s13 = sphi %s662_s13, %s746_s13   ;;  %s615_s12 = sphi %s660_s12, %s745_s12  }
   0x4   : > { %p23_p0 = scmp.ge.s32.totalorder %s22_s17, 3  ;;  %p500_p1 = scmp.ge.s32.totalorder %s631_s16, 1 }
   0x5   : > { %p151_p2 = scmp.lt.s32.totalorder %s631_s16, 7 }
   0x6   : > { %s750_s17 = smov (%p23_p0, %s22_s17), 0  ;;  %s752_s18 = smov (!%p23_p0, %s25_s18), %s627_s15 }
   0x7   : > { %p152_p3 = pnand %p500_p1, %p151_p2  ;;  %p27_p4 = scmp.ge.s32.totalorder %s752_s18, 2 }
   0x8   : > { %p178_p5 = scmp.lt.s32.totalorder (!%p152_p3), %s619_s13, 1  ;;  %s504_s19 = sshll.u32 (!%p152_p3), %s615_s12, 1  ;;  %v633_v0 = vmov (!%p152_p3), 0.0   ;;  %vm636_vm0 = vmmov (!%p152_p3), 0   ;;  %vm215_vm1 = vcmask (!%p152_p3), 1031168   ;;  %vm207_vm2 = vcmask (!%p152_p3), 1039360  }
   0x9   : > { %s754_s18 = smov (%p27_p4, %s752_s18), 0  ;;  %155 = sbr.rel (%p152_p3) target bundleno = 516 (0x204), region = 32 }
   0xa   : > { %522 = vmatprep.subr.bf16.mxu0 (!%p152_p3), %v633_v0  ;;  %528 = vmatprep.subr.bf16.mxu1 (!%p152_p3), %v633_v0  ;;  %s634_s25 = smov (!%p152_p3), 126   ;;  %s635_s26 = smov (!%p152_p3), 127   ;;  %vm217_vm3 = vcmask (!%p152_p3), 1041408   ;;  %vm221_vm4 = vcmask (!%p152_p3), 1043456   ;;  %vm229_vm5 = vcmask (!%p152_p3), 1045504   ;;  %v637_v14 = vmov (!%p152_p3), 0  }
   0xb   : > { %524 = vmatprep.mubr.msk.bf16.mxu0 (!%p152_p3), %vm636_vm0, %v633_v0  ;;  %530 = vmatprep.mubr.msk.bf16.mxu1 (!%p152_p3), %vm636_vm0, %v633_v0  ;;  %s638_s27 = smov (!%p152_p3), 110   ;;  %v224_v19 = vld [vmem:[%s742_s1] sm:$0xf] (!%p152_p3)  ;;  %vm225_vm6 = vcmask (!%p152_p3), 97280   ;;  %s639_s30 = smov (!%p152_p3), 92   ;;  %vm286_vm7 = vcmask (!%p152_p3), 900096  }
   0xc   : > { %588 = vset.pattern.permute.xlu0 (!%p152_p3), %v637_v14  ;;  %v395_v20 = vld [vmem:[%s743_s2] sm:$0xff] (!%p152_p3)  ;;  %vm343_vm8 = vcmask (!%p152_p3), 752640   ;;  %v510_v30 = vld [vmem:[%s742_s1 + $0x8] sm:$0xf] (!%p152_p3)  ;;  %p185_p6 = scmp.lt.s32.totalorder (!%p152_p3), %s615_s12, 2 }
   0xd   : > { %v508_v26 = vld [vmem:[%s742_s1 + $0x4] sm:$0xf] (!%p152_p3) }
  0x10   : > { %s756_s13 = smov (!%p178_p5, %s619_s13), 1  ;;  %s758_s12 = smov (!%p185_p6, %s615_s12), 2 }
  0x11   : > { %s515_s20 = sshll.u32 %s756_s13, 3  ;;  %s540_s10 = smul.u32 3, %s756_s13 }
  0x12   : > { %s182_s23 = scalar_lea.vmem %s741_s0, %s515_s20 }
  0x13   : > { %s193_s24 = scalar_lea.vmem %s182_s23, %s504_s19  ;;  %s188_s11 = sadd.s32 %s540_s10, %s758_s12 }
  0x14   : > { %v194_v1 = vld [vmem:[%s193_s24] sm:$0x3]  ;;  %v506_v2 = vld [vmem:[%s193_s24 + $0x2] sm:$0x3]  ;;  %s503_s19 = sshll.u32 %s188_s11, 2 }
  0x15   : > { %v209_v3 = vrot.slane %v194_v1, 4  ;;  %v201_v4 = vrot.slane %v194_v1, 6  ;;  %v210_v5 = vrot.slane %v506_v2, 4  ;;  %v202_v6 = vrot.slane %v506_v2, 6  ;;  %s190_s22 = scalar_lea.vmem %s744_s3, %s503_s19 }
  0x17   : > { %211 = vrot.lane.b32.xlu1 %v209_v3, %s634_s25  ;;  %203 = vrot.lane.b32.xlu0 %v201_v4, %s635_s26 }
  0x1b   : > { %213 = vrot.lane.b32.xlu1 %v210_v5, %s634_s25  ;;  %205 = vrot.lane.b32.xlu0 %v202_v6, %s635_s26 }
  0x89   : > { %v212_v7 = vpop.permute.xlu1 %211  ;;  %v204_v8 = vpop.permute.xlu0 %203 }
  0x8d   : > { %v214_v9 = vpop.permute.xlu1 %213  ;;  %v206_v10 = vpop.permute.xlu0 %205 }
  0x8e   : > { %v216_v11 = vsel %vm215_vm1, %v212_v7, %v214_v9  ;;  %v208_v12 = vsel %vm207_vm2, %v204_v8, %v206_v10  ;;  %v275_v13 = vsel %vm217_vm3, %v506_v2, %v206_v10 }
  0x8f   : > { %v277_v15 = vsel %vm221_vm4, %v275_v13, %v214_v9  ;;  %v220_v16 = vsel %vm217_vm3, %v194_v1, %v208_v12 }
  0x90   : > { %284 = vrot.lane.b32.xlu1 %v277_v15, %s638_s27  ;;  %v223_v17 = vsel %vm221_vm4, %v220_v16, %v216_v11 }
  0x91   : > { %282 = vrot.lane.b32.xlu0 %v223_v17, %s638_s27  ;;  %v230_v18 = vsel %vm229_vm5, %v223_v17, 0 }
  0x92   : > { %523 = vmatpush3.bf16.msra.mxu0 %v230_v18 }
  0x93   : > { %534 = vmatprep.subr.bf16.mxu0 %v633_v0 }
  0x94   : > { %341 = vrot.lane.b32.xlu1 %v277_v15, %s639_s30 }
  0x95   : > { %339 = vrot.lane.b32.xlu0 %v223_v17, %s639_s30  ;;  %525 = vmatmul.mubr.msk.bf16.vlgmr.msra.gmra.mrb[0].mxu0 %vm225_vm6, %v224_v19 }
  0x96   : > { %536 = vmatprep.mubr.msk.bf16.mxu0 %vm636_vm0, %v633_v0 }
  0x99   : > { %398 = vperm.xlu0 %588, %v395_v20  }
 0x102   : > { %v285_v21 = vpop.permute.xlu1 %284 }
 0x103   : > { %v283_v22 = vpop.permute.xlu0 %282 }
 0x104   : > { %v287_v23 = vsel %vm286_vm7, %v283_v22, %v285_v21 }
 0x105   : > { %v292_v24 = vsel %vm229_vm5, %v287_v23, 0 }
 0x106   : > { %v342_v25 = vpop.permute.xlu1 %341  ;;  %529 = vmatpush3.bf16.msra.mxu1 %v292_v24 }
 0x107   : > { %v340_v27 = vpop.permute.xlu0 %339 }
 0x108   : > { %v344_v28 = vsel %vm343_vm8, %v340_v27, %v342_v25 }
 0x109   : > { %v349_v29 = vsel %vm229_vm5, %v344_v28, 0  ;;  %531 = vmatmul.mubr.msk.bf16.vlgmr.msra.gmra.mrb[0].mxu1 %vm225_vm6, %v508_v26 }
 0x10a   : > { %535 = vmatpush3.bf16.msra.mxu0 %v349_v29 }
 0x10d   : > { %537 = vmatmul.mubr.msk.bf16.vlgmr.msra.gmra.mrb[4].mxu0 %vm225_vm6, %v510_v30 }
 0x118   : > { %v399_v41 = vpop.permute.xlu0 %398 }
 0x168   : > { %v266_v31 = vpop.f32.mrb[0].mxu0 }
 0x169   : > { %v526_v32 = vpop.f32.mrb[1].mxu0 }
 0x16a   : > { %v269_v33 = vpop.f32.mrb[2].mxu0 }
 0x16b   : > { %v527_v34 = vpop.f32.mrb[3].mxu0 }
 0x1dc   : > { %v328_v35 = vpop.f32.mrb[0].mxu1 }
 0x1dd   : > { %v335_v36 = vadd.f32 %v328_v35, %v266_v31  ;;  %v532_v37 = vpop.f32.mrb[1].mxu1 }
 0x1de   : > { %v331_v38 = vpop.f32.mrb[2].mxu1 }
 0x1df   : > { %v533_v39 = vpop.f32.mrb[3].mxu1 }
 0x1e0   : > { %v385_v40 = vpop.f32.mrb[4].mxu0 }
 0x1e1   : > { %v392_v42 = vadd.f32 %v385_v40, %v335_v36  ;;  %v538_v43 = vpop.f32.mrb[5].mxu0 }
 0x1e2   : > { %v388_v44 = vpop.f32.mrb[6].mxu0 }
 0x1e3   : > { %v401_v45 = vadd.f32 %v399_v41, %v392_v42  ;;  %v539_v46 = vpop.f32.mrb[7].mxu0 }
 0x1e5   : > { %v512_v47 = vmul.f32 -1.442695, %v401_v45 }
 0x1e7   : > { %589 = vpow2.f32 %v512_v47 }
 0x1f1   : > { %v590_v48 = vpop.eup %589 }
 0x1f2   : > { %v405_v49 = vadd.f32 1.0, %v590_v48 }
 0x1f4   : > { %591 = vrcp.f32 %v405_v49 }
 0x1fe   : > { %v592_v50 = vpop.eup %591 }
 0x1ff   : > { %v408_v51 = vmul.f32 %v592_v50, %v401_v45 }
 0x201   : > { %v409_v52 = vpack.c.bf16 %v408_v51, %v408_v51 }
 0x203   : > { %410 = vst [vmem:[%s190_s22] sm:$0xf] %v409_v52 }
 0x204 PF: > { %s13_s16 = sadd.s32 1, %s631_s16   ;;  %s745_s12 = smov %s623_s14 }
 0x205   : > { %p10_p7 = scmp.ge.s32.totalorder %s13_s16, 8   ;;  %s746_s13 = smov %s627_s15 }
 0x206   : > { %s747_s14 = smov %s750_s17  ;;  %s748_s15 = smov %s754_s18 }
 0x207   :  { %12 = sbr.rel (!%p10_p7) target bundleno = 3 (0x3), region = 66 }

</bundles_post_ra>
